<compile_context>
chip_gen: v7x
topology: tpu7x:2x2x1
jax: 0.10.0
libtpu: 0.0.40
codegen_flags: <defaults>
</compile_context>

<pallas_src>
import functools
import math

import jax
import jax.numpy as jnp
from jax.experimental import pallas as pl
from jax.experimental.pallas import tpu as pltpu

_MAX_BLOCK_BYTES = 2 * 1024 * 1024     # per-operand block budget (caller dtype)
_S_MAX_ELEMS = 512 * 1024              # selector-matrix budget (~2 MiB f32)
_NSEGB_MAX = 128                       # cap on MXU N-dim (MACs/element cap)
_MAX_COL_ALIGN = 16384                 # flat path only if lcm(ws, 128) <= this
_SPLIT_MIN_ELEMS = 2 * 1024 * 1024     # force a 2-way split only for big work
_VMEM_CAP_BYTES = 48 * 1024 * 1024     # stays under v7x's 64 MiB physical VMEM


def _cdiv(a, b):
    return -(-a // b)


def _round_up(x, m):
    return _cdiv(x, m) * m


@functools.lru_cache(maxsize=1)
def _num_tensorcores():
    """Best-effort TensorCore count (v7x has 2; v5e/v6e have 1)."""
    try:
        info = pltpu.get_tpu_info()
    except Exception:
        return 2
    for name in ("num_cores", "core_count", "num_tensorcores", "tensorcore_count"):
        v = getattr(info, name, None)
        if isinstance(v, int) and v > 0:
            return v
    return 2


def _vmem_limit(in_block_bytes, block_elems, s_elems):
    need = (4 * in_block_bytes          # 2 operands x 2 pipeline buffers
            + 2 * s_elems * 4           # resident selector matrix
            + 6 * block_elems * 4       # f32 upcasts / products / mask temps
            + (1 << 16))                # out tiles + slack
    return int(min(_VMEM_CAP_BYTES, max(16 * 1024 * 1024, 2 * need)))


# ----------------------------------------------------------------------------
# Flat path (overlap == 0): stream the raw (B, T) signal, MXU segment reduce.
# ----------------------------------------------------------------------------

def _make_flat_kernel(ws, batch, n_frames, rb, cb, nsegb, eps):
    valid_cols = n_frames * ws

    def kernel(x_ref, t_ref, s_ref, out_ref):
        i = pl.program_id(0)
        j = pl.program_id(1)
        x = x_ref[...].astype(jnp.float32)
        t = t_ref[...].astype(jnp.float32)
        s = s_ref[...]
        e = jnp.float32(eps)

        def block_sum(xv, tv, seg_mask):
            # Per-segment sums via the (otherwise idle) MXU: (rb,cb) @ (cb,nsegb).
            rss = jnp.dot(tv * tv, s, preferred_element_type=jnp.float32)
            stx = jnp.dot(tv * xv, s, preferred_element_type=jnp.float32)
            sxx = jnp.dot(xv * xv, s, preferred_element_type=jnp.float32)
            a = (stx + e) / (rss + e)
            sss = a * a * rss
            # Single-pass residual energy; clamp tiny negative rounding so
            # log10 stays finite.
            snn = jnp.maximum(sxx - (2.0 * stx - a * rss) * a, 0.0)
            sdr = 10.0 * jnp.log10((sss + e) / (snn + e))
            if seg_mask is not None:
                sdr = jnp.where(seg_mask, sdr, 0.0)
            return jnp.sum(sdr)

        fully_valid = jnp.logical_and((i + 1) * rb <= batch,
                                      (j + 1) * cb <= valid_cols)

        @pl.when(fully_valid)
        def _():
            out_ref[...] = jnp.full((1, 8, 128), block_sum(x, t, None),
                                    jnp.float32)

        @pl.when(jnp.logical_not(fully_valid))
        def _():
            # Edge block: zero ragged rows / columns (this also sanitizes any
            # garbage read from the out-of-bounds block overhang before it can
            # reach the MXU) and drop invalid segments from the partial sum.
            row = i * rb + jax.lax.broadcasted_iota(jnp.int32, (rb, cb), 0)
            col = j * cb + jax.lax.broadcasted_iota(jnp.int32, (rb, cb), 1)
            ok = jnp.logical_and(row < batch, col < valid_cols)
            srow = i * rb + jax.lax.broadcasted_iota(jnp.int32, (rb, nsegb), 0)
            sseg = j * nsegb + jax.lax.broadcasted_iota(jnp.int32, (rb, nsegb), 1)
            seg_mask = jnp.logical_and(srow < batch, sseg < n_frames)
            out_ref[...] = jnp.full(
                (1, 8, 128),
                block_sum(jnp.where(ok, x, 0.0), jnp.where(ok, t, 0.0), seg_mask),
                jnp.float32)

    return kernel


def _si_sdr_mean_flat(x, t, ws, n_frames, eps):
    """Mean per-window SI-SDR, streaming straight from the raw (B, T) signal.

    Only valid for overlap == 0: window w of row b covers columns
    [w*ws, (w+1)*ws).  No host reshape / transpose / slice is performed.
    """
    B, T = x.shape
    n_seg = B * n_frames
    valid_cols = n_frames * ws
    itemsize = jnp.dtype(x.dtype).itemsize
    col_align = (ws * 128) // math.gcd(ws, 128)   # lcm(ws, 128)

    # Rows per block (batch rows sit on sublanes).
    rb = B if B <= 8 else 8 * min(B // 8, 4)
    num_i = _cdiv(B, rb)

    # Columns per block: multiple of lcm(ws, 128) so segments never straddle a
    # block boundary; bounded by the byte budget, the selector-matrix budget
    # and an MXU-cost cap (MACs/element = 3 * nsegb).
    budget_elems = max(col_align, _MAX_BLOCK_BYTES // itemsize)
    m_budget = max(1, (budget_elems // rb) // col_align)
    m_smat = max(1, math.isqrt(_S_MAX_ELEMS * ws) // col_align)
    m_mxu = max(1, _NSEGB_MAX // max(1, col_align // ws))
    m_cols = _cdiv(valid_cols, col_align)
    m = max(1, min(m_budget, m_smat, m_mxu, m_cols))
    num_j = _cdiv(valid_cols, m * col_align)

    # v7x: keep both TensorCores busy with >=2 balanced column blocks whenever
    # the work is large enough that the extra pipeline step is noise.
    if (num_i * num_j == 1 and _num_tensorcores() >= 2
            and valid_cols >= 2 * col_align
            and B * valid_cols >= _SPLIT_MIN_ELEMS):
        num_j = 2
    if num_j > 1:
        m = _cdiv(_cdiv(valid_cols, num_j), col_align)     # balanced blocks
        cb = m * col_align
        num_j = _cdiv(valid_cols, cb)
    else:
        # Single column block: cover valid_cols without reading past T.
        cb = min(_round_up(valid_cols, 128), T)
    nsegb = cb // ws

    # Block-diagonal selector: sel[c, s] = 1 iff column c belongs to segment s.
    sel = (jnp.arange(cb, dtype=jnp.int32)[:, None] // ws
           == jnp.arange(nsegb, dtype=jnp.int32)[None, :]).astype(jnp.float32)

    kernel = _make_flat_kernel(ws, B, n_frames, rb, cb, nsegb, eps)
    num_out = num_i * num_j
    out = pl.pallas_call(
        kernel,
        out_shape=jax.ShapeDtypeStruct((num_out, 8, 128), jnp.float32),
        grid_spec=pltpu.PrefetchScalarGridSpec(
            num_scalar_prefetch=0,
            grid=(num_i, num_j),
            in_specs=[
                pl.BlockSpec((rb, cb), lambda i, j: (i, j)),
                pl.BlockSpec((rb, cb), lambda i, j: (i, j)),
                pl.BlockSpec((cb, nsegb), lambda i, j: (0, 0)),  # fetched once
            ],
            out_specs=pl.BlockSpec((1, 8, 128),
                                   lambda i, j: (i * num_j + j, 0, 0)),
        ),
        compiler_params=pltpu.CompilerParams(
            dimension_semantics=("parallel", "parallel"),
            vmem_limit_bytes=_vmem_limit(rb * cb * itemsize, rb * cb, cb * nsegb),
        ),
    )(x, t, sel)
    return jnp.sum(out[:, 0, 0]) / jnp.float32(n_seg)


# ----------------------------------------------------------------------------
# Rows fallback (overlap > 0 after host gather, or very awkward window sizes).
# ----------------------------------------------------------------------------

def _make_rows_kernel(n_seg, seg_block, eps):
    def kernel(x_ref, t_ref, out_ref):
        x = x_ref[...].astype(jnp.float32)
        t = t_ref[...].astype(jnp.float32)
        e = jnp.float32(eps)
        # Cross-lane sums go through the XLU; this fallback only runs for
        # overlap > 0 or huge window sizes where the host gather / few large
        # segments dominate anyway (MXU-ones reduce possible if XLU binds).
        rss = jnp.sum(t * t, axis=-1, keepdims=True)
        stx = jnp.sum(t * x, axis=-1, keepdims=True)
        sxx = jnp.sum(x * x, axis=-1, keepdims=True)
        a = (stx + e) / (rss + e)
        sss = a * a * rss
        snn = jnp.maximum(sxx - (2.0 * stx - a * rss) * a, 0.0)
        sdr = 10.0 * jnp.log10((sss + e) / (snn + e))
        seg = (pl.program_id(0) * seg_block
               + jax.lax.broadcasted_iota(jnp.int32, sdr.shape, 0))
        out_ref[...] = jnp.full((1, 8, 128),
                                jnp.sum(jnp.where(seg < n_seg, sdr, 0.0)),
                                jnp.float32)
    return kernel


def _si_sdr_mean_rows(x_seg, t_seg, eps):
    """x_seg, t_seg: (n_seg, ws). Returns the mean per-segment SI-SDR (f32)."""
    n_seg, ws = x_seg.shape
    itemsize = jnp.dtype(x_seg.dtype).itemsize
    budget_rows = max(1, (_MAX_BLOCK_BYTES // itemsize) // ws)
    seg_block = max(8, (budget_rows // 8) * 8)
    num_blocks = _cdiv(n_seg, seg_block)
    if (num_blocks == 1 and _num_tensorcores() >= 2 and n_seg >= 16
            and n_seg * ws >= _SPLIT_MIN_ELEMS):
        num_blocks = 2
    if num_blocks > 1:
        seg_block = _round_up(_cdiv(n_seg, num_blocks), 8)   # balanced blocks
        num_blocks = _cdiv(n_seg, seg_block)
    else:
        seg_block = n_seg            # single block: exact extent, always legal

    kernel = _make_rows_kernel(n_seg, seg_block, eps)
    out = pl.pallas_call(
        kernel,
        out_shape=jax.ShapeDtypeStruct((num_blocks, 8, 128), jnp.float32),
        grid_spec=pltpu.PrefetchScalarGridSpec(
            num_scalar_prefetch=0,
            grid=(num_blocks,),
            in_specs=[
                pl.BlockSpec((seg_block, ws), lambda i: (i, 0)),
                pl.BlockSpec((seg_block, ws), lambda i: (i, 0)),
            ],
            out_specs=pl.BlockSpec((1, 8, 128), lambda i: (i, 0, 0)),
        ),
        compiler_params=pltpu.CompilerParams(
            dimension_semantics=("parallel",),
            vmem_limit_bytes=_vmem_limit(seg_block * ws * itemsize,
                                         seg_block * ws, 0),
        ),
    )(x_seg, t_seg)
    return jnp.sum(out[:, 0, 0]) / jnp.float32(n_seg)


# ----------------------------------------------------------------------------
# SegSdrLoss.forward equivalent.
# ----------------------------------------------------------------------------

def seg_sdr_loss(input, target, window_sizes, factor=0.2, overlap=0.0):
    """JAX/Pallas equivalent of SegSdrLoss.forward."""
    if factor == 0:
        return jnp.zeros((), jnp.float32)
    hop = 1.0 - overlap
    T = input.shape[-1]
    x = input.reshape(-1, T)            # free reshape; caller dtype kept
    y = target.reshape(-1, T)
    # torch semantics: eps comes from the *input* dtype (bf16 -> 7.8e-3), even
    # though the kernel upcasts and computes in f32.
    eps = float(jnp.finfo(input.dtype).eps)
    B = x.shape[0]

    # TODO(synk): with overlap == 0 and several window sizes, a single fused
    # pass accumulating gcd-granularity partial sums would cut HBM traffic from
    # len(window_sizes)x to 1x.
    loss = jnp.zeros((), jnp.float32)
    for ws in window_sizes:
        if ws > T:
            ws = T   # torch fallback (warns, then uses input.size(1) == T here)
        stride = int(hop * ws)          # matches torch's int(self.hop * ws)
        n_frames = (T - ws) // stride + 1
        n_seg = B * n_frames
        col_align = (ws * 128) // math.gcd(ws, 128)
        if stride == ws and col_align <= _MAX_COL_ALIGN:
            # overlap == 0: no host reshape / transpose / slice at all.
            loss = loss + _si_sdr_mean_flat(x, y, ws, n_frames, eps)
        elif stride == ws:
            xw = x[:, : n_frames * ws].reshape(n_seg, ws)
            yw = y[:, : n_frames * ws].reshape(n_seg, ws)
            loss = loss + _si_sdr_mean_rows(xw, yw, eps)
        else:
            # TODO(synk): overlap > 0 still materializes overlapping windows
            # host-side (gather); streaming frames from (B, T) via a
            # scalar-prefetched frame->offset index_map would remove this pass.
            idx = jnp.arange(n_frames)[:, None] * stride + jnp.arange(ws)[None, :]
            xw = x[:, idx].reshape(n_seg, ws)
            yw = y[:, idx].reshape(n_seg, ws)
            loss = loss + _si_sdr_mean_rows(xw, yw, eps)
    return (-loss * factor).astype(jnp.float32)


def _ref_seg_sdr_loss(input, target, window_sizes, factor=0.2, overlap=0.0):
    """Pure-JAX reference (mirrors the PyTorch math) for a sanity check."""
    eps = float(jnp.finfo(jnp.float32).eps)
    hop = 1.0 - overlap
    T = input.shape[-1]
    x = input.reshape(-1, T).astype(jnp.float32)
    y = target.reshape(-1, T).astype(jnp.float32)
    loss = jnp.zeros((), jnp.float32)
    for ws in window_sizes:
        ws = min(ws, T)
        stride = int(hop * ws)
        n_frames = (T - ws) // stride + 1
        idx = jnp.arange(n_frames)[:, None] * stride + jnp.arange(ws)[None, :]
        xw = x[:, idx].reshape(-1, ws)
        yw = y[:, idx].reshape(-1, ws)
        rss = jnp.sum(yw * yw, -1, keepdims=True)
        a = (jnp.sum(yw * xw, -1, keepdims=True) + eps) / (rss + eps)
        e_true = a * yw
        e_res = xw - e_true
        sdr = 10.0 * jnp.log10(
            (jnp.sum(e_true * e_true, -1) + eps)
            / (jnp.sum(e_res * e_res, -1) + eps))
        loss = loss + jnp.mean(sdr)
    return -loss * factor


if __name__ == "__main__":
    key = jax.random.PRNGKey(0)
    k = jax.random.split(key, 8)

    def check(out, ref, name, rtol=2e-4, atol=5e-4):
        assert out.shape == ()
        assert bool(jnp.isfinite(out)), (name, out)
        assert jnp.allclose(out, ref, rtol=rtol, atol=atol), (name, out, ref)

    # Case 1: tiny windows, overlap 0 -> flat/MXU path, single fully-valid block.
    t1 = jax.random.normal(k[0], (2, 64), jnp.float32)
    x1 = t1 + 0.1 * jax.random.normal(k[1], (2, 64), jnp.float32)
    out1 = jax.block_until_ready(seg_sdr_loss(x1, t1, [16, 32]))
    check(out1, _ref_seg_sdr_loss(x1, t1, [16, 32]), "case1")

    # Case 2: larger / non-128-multiple windows -> flat path; ws=300 exercises
    # the masked edge-block branch (block overhangs the valid region).
    t2 = jax.random.normal(k[2], (2, 1536), jnp.float32)
    x2 = t2 + 0.1 * jax.random.normal(k[3], (2, 1536), jnp.float32)
    out2 = jax.block_until_ready(seg_sdr_loss(x2, t2, [128, 300]))
    check(out2, _ref_seg_sdr_loss(x2, t2, [128, 300]), "case2")

    # Case 3: ragged batch (B=10) + multi-block 2-D grid (shrunken block
    # budget) -> mixes fully-valid interior blocks with masked row/col edges.
    _saved_budget = _MAX_BLOCK_BYTES
    _MAX_BLOCK_BYTES = 32 * 1024
    t3 = jax.random.normal(k[4], (10, 2100), jnp.float32)
    x3 = t3 + 0.1 * jax.random.normal(k[5], (10, 2100), jnp.float32)
    out3 = jax.block_until_ready(seg_sdr_loss(x3, t3, [96]))
    check(out3, _ref_seg_sdr_loss(x3, t3, [96]), "case3")
    _MAX_BLOCK_BYTES = _saved_budget

    # Case 4: overlap > 0 -> host gather + rows-layout fallback kernel.
    t4 = jax.random.normal(k[6], (2, 256), jnp.float32)
    x4 = t4 + 0.1 * jax.random.normal(k[7], (2, 256), jnp.float32)
    out4 = jax.block_until_ready(seg_sdr_loss(x4, t4, [64], overlap=0.5))
    check(out4, _ref_seg_sdr_loss(x4, t4, [64], overlap=0.5), "case4")

    print("KERNEL_OK")
</pallas_src>

<mosaic_0001>
module attributes {stable_mosaic.version = 11 : i64} {
  func.func @kernel(%arg0: i32, %arg1: i32, %arg2: memref<2x64xf32, #tpu.memory_space<vmem>>, %arg3: memref<2x64xf32, #tpu.memory_space<vmem>>, %arg4: memref<64x4xf32, #tpu.memory_space<vmem>>, %arg5: memref<1x8x128xf32, #tpu.memory_space<vmem>>) attributes {dimension_semantics = [#tpu.dimension_semantics<parallel>, #tpu.dimension_semantics<parallel>], iteration_bounds = array<i64: 1, 1>, scalar_prefetch = 0 : i64, scratch_operands = 0 : i64, tpu.core_type = #tpu.core_type<tc>, window_params = [{transform_indices = @transform_0, window_bounds = array<i64: 2, 64>}, {transform_indices = @transform_1, window_bounds = array<i64: 2, 64>}, {pipeline_mode = #tpu.pipeline_mode<synchronous>, transform_indices = @transform_2, window_bounds = array<i64: 64, 4>}, {transform_indices = @transform_3, window_bounds = array<i64: 1, 8, 128>}]} {
    %c0 = arith.constant 0 : index
    %c0_0 = arith.constant 0 : index
    %0 = vector.load %arg2[%c0, %c0_0] : memref<2x64xf32, #tpu.memory_space<vmem>>, vector<2x64xf32>
    %c0_1 = arith.constant 0 : index
    %c0_2 = arith.constant 0 : index
    %1 = vector.load %arg3[%c0_1, %c0_2] : memref<2x64xf32, #tpu.memory_space<vmem>>, vector<2x64xf32>
    %c0_3 = arith.constant 0 : index
    %c0_4 = arith.constant 0 : index
    %2 = vector.load %arg4[%c0_3, %c0_4] : memref<64x4xf32, #tpu.memory_space<vmem>>, vector<64x4xf32>
    %c1_i32 = arith.constant 1 : i32
    %3 = arith.addi %arg0, %c1_i32 : i32
    %c2_i32 = arith.constant 2 : i32
    %4 = arith.muli %3, %c2_i32 : i32
    %c2_i32_5 = arith.constant 2 : i32
    %5 = arith.cmpi sle, %4, %c2_i32_5 : i32
    %c1_i32_6 = arith.constant 1 : i32
    %6 = arith.addi %arg1, %c1_i32_6 : i32
    %c64_i32 = arith.constant 64 : i32
    %7 = arith.muli %6, %c64_i32 : i32
    %c64_i32_7 = arith.constant 64 : i32
    %8 = arith.cmpi sle, %7, %c64_i32_7 : i32
    %9 = arith.andi %5, %8 : i1
    %10 = arith.extui %9 : i1 to i32
    %cst = arith.constant 1.1920929E-7 : f32
    %c0_i32 = arith.constant 0 : i32
    %11 = arith.cmpi ne, %10, %c0_i32 : i32
    scf.if %11 {
      %15 = arith.mulf %1, %1 : vector<2x64xf32>
      %cst_10 = arith.constant dense<0.000000e+00> : vector<2x4xf32>
      %16 = tpu.matmul %15, %2, %cst_10 {dimension_numbers = #tpu.dot_dimension_numbers<[1], [0], [0], [1], [0, 0, 1, 1], [], []>} : vector<2x64xf32>, vector<64x4xf32>, vector<2x4xf32> -> vector<2x4xf32>
      %17 = arith.mulf %1, %0 : vector<2x64xf32>
      %cst_11 = arith.constant dense<0.000000e+00> : vector<2x4xf32>
      %18 = tpu.matmul %17, %2, %cst_11 {dimension_numbers = #tpu.dot_dimension_numbers<[1], [0], [0], [1], [0, 0, 1, 1], [], []>} : vector<2x64xf32>, vector<64x4xf32>, vector<2x4xf32> -> vector<2x4xf32>
      %19 = arith.mulf %0, %0 : vector<2x64xf32>
      %cst_12 = arith.constant dense<0.000000e+00> : vector<2x4xf32>
      %20 = tpu.matmul %19, %2, %cst_12 {dimension_numbers = #tpu.dot_dimension_numbers<[1], [0], [0], [1], [0, 0, 1, 1], [], []>} : vector<2x64xf32>, vector<64x4xf32>, vector<2x4xf32> -> vector<2x4xf32>
      %21 = vector.broadcast %cst : f32 to vector<2x4xf32>
      %22 = arith.addf %18, %21 : vector<2x4xf32>
      %23 = vector.broadcast %cst : f32 to vector<2x4xf32>
      %24 = arith.addf %16, %23 : vector<2x4xf32>
      %25 = arith.divf %22, %24 : vector<2x4xf32>
      %26 = arith.mulf %25, %25 : vector<2x4xf32>
      %27 = arith.mulf %26, %16 : vector<2x4xf32>
      %cst_13 = arith.constant 2.000000e+00 : f32
      %28 = vector.broadcast %cst_13 : f32 to vector<2x4xf32>
      %29 = arith.mulf %28, %18 : vector<2x4xf32>
      %30 = arith.mulf %25, %16 : vector<2x4xf32>
      %31 = arith.subf %29, %30 : vector<2x4xf32>
      %32 = arith.mulf %31, %25 : vector<2x4xf32>
      %33 = arith.subf %20, %32 : vector<2x4xf32>
      %cst_14 = arith.constant 0.000000e+00 : f32
      %34 = vector.broadcast %cst_14 : f32 to vector<2x4xf32>
      %35 = arith.maximumf %33, %34 : vector<2x4xf32>
      %36 = vector.broadcast %cst : f32 to vector<2x4xf32>
      %37 = arith.addf %27, %36 : vector<2x4xf32>
      %38 = vector.broadcast %cst : f32 to vector<2x4xf32>
      %39 = arith.addf %35, %38 : vector<2x4xf32>
      %40 = arith.divf %37, %39 : vector<2x4xf32>
      %41 = math.log %40 : vector<2x4xf32>
      %cst_15 = arith.constant 0.434294492 : f32
      %42 = vector.broadcast %cst_15 : f32 to vector<2x4xf32>
      %43 = arith.mulf %41, %42 : vector<2x4xf32>
      %cst_16 = arith.constant 1.000000e+01 : f32
      %44 = vector.broadcast %cst_16 : f32 to vector<2x4xf32>
      %45 = arith.mulf %44, %43 : vector<2x4xf32>
      %46 = vector.shape_cast %45 : vector<2x4xf32> to vector<1x2x4xf32>
      %cst_17 = arith.constant dense<0.000000e+00> : vector<1xf32>
      %47 = vector.multi_reduction <add>, %46, %cst_17 [1, 2] : vector<1x2x4xf32> to vector<1xf32>
      %48 = vector.shape_cast %47 : vector<1xf32> to vector<1x1x1xf32>
      %49 = vector.extract %48[0, 0, 0] : f32 from vector<1x1x1xf32>
      %50 = vector.broadcast %49 : f32 to vector<1x8x128xf32>
      %c0_18 = arith.constant 0 : index
      %c0_19 = arith.constant 0 : index
      %c0_20 = arith.constant 0 : index
      %51 = vector.load %arg5[%c0_18, %c0_19, %c0_20] : memref<1x8x128xf32, #tpu.memory_space<vmem>>, vector<1x8x128xf32>
      tpu.vector_store %arg5[%c0_18, %c0_19, %c0_20], %50 {strides = array<i32>} : memref<1x8x128xf32, #tpu.memory_space<vmem>>, vector<1x8x128xf32>,
    } else {
    }
    %true = arith.constant true
    %12 = arith.xori %9, %true : i1
    %13 = arith.extui %12 : i1 to i32
    %cst_8 = arith.constant 1.1920929E-7 : f32
    %c0_i32_9 = arith.constant 0 : i32
    %14 = arith.cmpi ne, %13, %c0_i32_9 : i32
    scf.if %14 {
      %c2_i32_10 = arith.constant 2 : i32
      %15 = arith.muli %arg0, %c2_i32_10 : i32
      %16 = tpu.iota {dimensions = array<i32: 0>} : vector<2x64xi32>
      %17 = vector.broadcast %15 : i32 to vector<2x64xi32>
      %18 = arith.addi %17, %16 : vector<2x64xi32>
      %c64_i32_11 = arith.constant 64 : i32
      %19 = arith.muli %arg1, %c64_i32_11 : i32
      %20 = tpu.iota {dimensions = array<i32: 1>} : vector<2x64xi32>
      %21 = vector.broadcast %19 : i32 to vector<2x64xi32>
      %22 = arith.addi %21, %20 : vector<2x64xi32>
      %c2_i32_12 = arith.constant 2 : i32
      %23 = vector.broadcast %c2_i32_12 : i32 to vector<2x64xi32>
      %24 = arith.cmpi slt, %18, %23 : vector<2x64xi32>
      %c64_i32_13 = arith.constant 64 : i32
      %25 = vector.broadcast %c64_i32_13 : i32 to vector<2x64xi32>
      %26 = arith.cmpi slt, %22, %25 : vector<2x64xi32>
      %27 = arith.andi %24, %26 : vector<2x64xi1>
      %c2_i32_14 = arith.constant 2 : i32
      %28 = arith.muli %arg0, %c2_i32_14 : i32
      %29 = tpu.iota {dimensions = array<i32: 0>} : vector<2x4xi32>
      %30 = vector.broadcast %28 : i32 to vector<2x4xi32>
      %31 = arith.addi %30, %29 : vector<2x4xi32>
      %c4_i32 = arith.constant 4 : i32
      %32 = arith.muli %arg1, %c4_i32 : i32
      %33 = tpu.iota {dimensions = array<i32: 1>} : vector<2x4xi32>
      %34 = vector.broadcast %32 : i32 to vector<2x4xi32>
      %35 = arith.addi %34, %33 : vector<2x4xi32>
      %c2_i32_15 = arith.constant 2 : i32
      %36 = vector.broadcast %c2_i32_15 : i32 to vector<2x4xi32>
      %37 = arith.cmpi slt, %31, %36 : vector<2x4xi32>
      %c4_i32_16 = arith.constant 4 : i32
      %38 = vector.broadcast %c4_i32_16 : i32 to vector<2x4xi32>
      %39 = arith.cmpi slt, %35, %38 : vector<2x4xi32>
      %40 = arith.andi %37, %39 : vector<2x4xi1>
      %cst_17 = arith.constant 0.000000e+00 : f32
      %41 = vector.broadcast %cst_17 : f32 to vector<2x64xf32>
      %42 = arith.select %27, %0, %41 : vector<2x64xi1>, vector<2x64xf32>
      %cst_18 = arith.constant 0.000000e+00 : f32
      %43 = vector.broadcast %cst_18 : f32 to vector<2x64xf32>
      %44 = arith.select %27, %1, %43 : vector<2x64xi1>, vector<2x64xf32>
      %45 = arith.mulf %44, %44 : vector<2x64xf32>
      %cst_19 = arith.constant dense<0.000000e+00> : vector<2x4xf32>
      %46 = tpu.matmul %45, %2, %cst_19 {dimension_numbers = #tpu.dot_dimension_numbers<[1], [0], [0], [1], [0, 0, 1, 1], [], []>} : vector<2x64xf32>, vector<64x4xf32>, vector<2x4xf32> -> vector<2x4xf32>
      %47 = arith.mulf %44, %42 : vector<2x64xf32>
      %cst_20 = arith.constant dense<0.000000e+00> : vector<2x4xf32>
      %48 = tpu.matmul %47, %2, %cst_20 {dimension_numbers = #tpu.dot_dimension_numbers<[1], [0], [0], [1], [0, 0, 1, 1], [], []>} : vector<2x64xf32>, vector<64x4xf32>, vector<2x4xf32> -> vector<2x4xf32>
      %49 = arith.mulf %42, %42 : vector<2x64xf32>
      %cst_21 = arith.constant dense<0.000000e+00> : vector<2x4xf32>
      %50 = tpu.matmul %49, %2, %cst_21 {dimension_numbers = #tpu.dot_dimension_numbers<[1], [0], [0], [1], [0, 0, 1, 1], [], []>} : vector<2x64xf32>, vector<64x4xf32>, vector<2x4xf32> -> vector<2x4xf32>
      %51 = vector.broadcast %cst_8 : f32 to vector<2x4xf32>
      %52 = arith.addf %48, %51 : vector<2x4xf32>
      %53 = vector.broadcast %cst_8 : f32 to vector<2x4xf32>
      %54 = arith.addf %46, %53 : vector<2x4xf32>
      %55 = arith.divf %52, %54 : vector<2x4xf32>
      %56 = arith.mulf %55, %55 : vector<2x4xf32>
      %57 = arith.mulf %56, %46 : vector<2x4xf32>
      %cst_22 = arith.constant 2.000000e+00 : f32
      %58 = vector.broadcast %cst_22 : f32 to vector<2x4xf32>
      %59 = arith.mulf %58, %48 : vector<2x4xf32>
      %60 = arith.mulf %55, %46 : vector<2x4xf32>
      %61 = arith.subf %59, %60 : vector<2x4xf32>
      %62 = arith.mulf %61, %55 : vector<2x4xf32>
      %63 = arith.subf %50, %62 : vector<2x4xf32>
      %cst_23 = arith.constant 0.000000e+00 : f32
      %64 = vector.broadcast %cst_23 : f32 to vector<2x4xf32>
      %65 = arith.maximumf %63, %64 : vector<2x4xf32>
      %66 = vector.broadcast %cst_8 : f32 to vector<2x4xf32>
      %67 = arith.addf %57, %66 : vector<2x4xf32>
      %68 = vector.broadcast %cst_8 : f32 to vector<2x4xf32>
      %69 = arith.addf %65, %68 : vector<2x4xf32>
      %70 = arith.divf %67, %69 : vector<2x4xf32>
      %71 = math.log %70 : vector<2x4xf32>
      %cst_24 = arith.constant 0.434294492 : f32
      %72 = vector.broadcast %cst_24 : f32 to vector<2x4xf32>
      %73 = arith.mulf %71, %72 : vector<2x4xf32>
      %cst_25 = arith.constant 1.000000e+01 : f32
      %74 = vector.broadcast %cst_25 : f32 to vector<2x4xf32>
      %75 = arith.mulf %74, %73 : vector<2x4xf32>
      %cst_26 = arith.constant 0.000000e+00 : f32
      %76 = vector.broadcast %cst_26 : f32 to vector<2x4xf32>
      %77 = arith.select %40, %75, %76 : vector<2x4xi1>, vector<2x4xf32>
      %78 = vector.shape_cast %77 : vector<2x4xf32> to vector<1x2x4xf32>
      %cst_27 = arith.constant dense<0.000000e+00> : vector<1xf32>
      %79 = vector.multi_reduction <add>, %78, %cst_27 [1, 2] : vector<1x2x4xf32> to vector<1xf32>
      %80 = vector.shape_cast %79 : vector<1xf32> to vector<1x1x1xf32>
      %81 = vector.extract %80[0, 0, 0] : f32 from vector<1x1x1xf32>
      %82 = vector.broadcast %81 : f32 to vector<1x8x128xf32>
      %c0_28 = arith.constant 0 : index
      %c0_29 = arith.constant 0 : index
      %c0_30 = arith.constant 0 : index
      %83 = vector.load %arg5[%c0_28, %c0_29, %c0_30] : memref<1x8x128xf32, #tpu.memory_space<vmem>>, vector<1x8x128xf32>
      tpu.vector_store %arg5[%c0_28, %c0_29, %c0_30], %82 {strides = array<i32>} : memref<1x8x128xf32, #tpu.memory_space<vmem>>, vector<1x8x128xf32>,
    } else {
    }
    return
  }
  func.func @transform_0(%arg0: i32, %arg1: i32) -> (i32, i32) {
    %c0_i32 = arith.constant 0 : i32
    return %arg0, %arg1 : i32, i32
  }
  func.func @transform_1(%arg0: i32, %arg1: i32) -> (i32, i32) {
    %c0_i32 = arith.constant 0 : i32
    return %arg0, %arg1 : i32, i32
  }
  func.func @transform_2(%arg0: i32, %arg1: i32) -> (i32, i32) {
    %c0_i32 = arith.constant 0 : i32
    %c0_i32_0 = arith.constant 0 : i32
    %c0_i32_1 = arith.constant 0 : i32
    return %c0_i32, %c0_i32_0 : i32, i32
  }
  func.func @transform_3(%arg0: i32, %arg1: i32) -> (i32, i32, i32) {
    %c1_i32 = arith.constant 1 : i32
    %0 = arith.muli %arg0, %c1_i32 : i32
    %1 = arith.addi %0, %arg1 : i32
    %c0_i32 = arith.constant 0 : i32
    %c0_i32_0 = arith.constant 0 : i32
    %c0_i32_1 = arith.constant 0 : i32
    return %1, %c0_i32, %c0_i32_0 : i32, i32, i32
  }
}

</mosaic_0001>

<bundles_post_ra>
// kernel: tpu_custom_call.1
= control target key start
LH: loop header
LB: loop body
LE: loop exit
PB: predicated region body
PF: predicated region fallthrough
CT: control target
= control target key end

     0   :  { %v751_v3 = vmov 0.0|0.0   ;;  %vm752_vm0 = vmmov 0   ;;  %v753_v6 = vmov 0.0   ;;  %s820_s0 = inlined_call_operand.vmem [shape: f32[2,64], index: 0, kind: input, shape index: {}]   ;;  %s821_s1 = inlined_call_operand.vmem [shape: f32[2,64], index: 1, kind: input, shape index: {}]   ;;  %s822_s2 = inlined_call_operand.vmem [shape: f32[64,4], index: 2, kind: input, shape index: {}]   ;;  %s823_s3 = inlined_call_operand.hbm [shape: f32[1,8,128], index: 3, kind: output, shape index: {}]  }
   0x1   :  { %v18_v0 = vld [vmem:[%s822_s2] sm:$0xff]  ;;  %v19_v1 = vld [vmem:[%s822_s2 + $0x8] sm:$0xff]  ;;  %v20_v2 = vld [vmem:[%s822_s2 + $0x10] sm:$0xff]  ;;  %679 = vmatprep.subr.bf16.mxu0 %v751_v3  ;;  %691 = vmatprep.subr.bf16.mxu1 %v751_v3 }
   0x2   :  { %v680_v4 = vpack.c.bf16 %v19_v1, %v18_v0  ;;  %v21_v5 = vld [vmem:[%s822_s2 + $0x18] sm:$0xff]  ;;  %638 = vmatprep.mubr.msk.f32.mxu0 %vm752_vm0, %v753_v6  ;;  %657 = vmatprep.mubr.msk.f32.mxu1 %vm752_vm0, %v753_v6 }
   0x3   :  { %v683_v7 = vpack.c.bf16 %v21_v5, %v20_v2 }
   0x4   :  { %681 = vmatpush3.bf16.msra.mxu0 %v680_v4  ;;  %693 = vmatpush3.bf16.msra.mxu1 %v680_v4 }
   0x5   :  { %8 = vsyncpa [#allocation3], 0  ;;  %682 = vmatprep.subr.bf16.mxu0 %v751_v3  ;;  %v22_v8 = vld [vmem:[%s822_s2 + $0x20] sm:$0xff]  ;;  %v23_v9 = vld [vmem:[%s822_s2 + $0x28] sm:$0xff]  ;;  %694 = vmatprep.subr.bf16.mxu1 %v751_v3  ;;  %vm37_vm1 = vcmask 523264   ;;  %vm279_vm2 = vcmask 25600  }
   0x6   :  { %v686_v10 = vpack.c.bf16 %v23_v9, %v22_v8  ;;  %v24_v11 = vld [vmem:[%s822_s2 + $0x30] sm:$0xff]  ;;  %v25_v12 = vld [vmem:[%s822_s2 + $0x38] sm:$0xff]  ;;  %v17_v14 = vld [vmem:[%s821_s1] sm:$0x3] }
   0x7   :  { %v689_v13 = vpack.c.bf16 %v25_v12, %v24_v11  ;;  %v16_v15 = vld [vmem:[%s820_s0] sm:$0x3]  ;;  %v36_v16 = vmul.f32 %v17_v14, %v17_v14  ;;  %s754_s0 = smov [#allocation2]  }
   0x8   :  { %684 = vmatpush3.bf16.msra.mxu0 %v683_v7  ;;  %696 = vmatpush3.bf16.msra.mxu1 %v683_v7  ;;  %v111_v17 = vmul.f32 %v17_v14, %v16_v15  ;;  %v185_v18 = vmul.f32 %v16_v15, %v16_v15  ;;  %s581_s1 = sshll.u32 %s754_s0, 4  ;;  %s582_s1 = int_to_ptr.vmem [resolvable:$true] %s581_s1 }
   0x9   :  { %685 = vmatprep.subr.bf16.mxu0 %v751_v3  ;;  %697 = vmatprep.subr.bf16.mxu1 %v751_v3  ;;  %s727_s5 = scalar_lea.vmem %s582_s1, 128  ;;  %p732_p1 = scmp.lt.s32.totalorder %s582_s1, %s582_s1 }
   0xa   :  { %p728_p0 = scmp.ne.s32.totalorder %s582_s1, %s727_s5  ;;  %p733_p2 = scmp.lt.s32.totalorder %s727_s5, %s727_s5 }
   0xc   :  { %687 = vmatpush3.bf16.msra.mxu0 %v686_v10  ;;  %699 = vmatpush3.bf16.msra.mxu1 %v686_v10  ;;  %p734_p3 = por %p733_p2, %p732_p1 }
   0xd   :  { %688 = vmatprep.subr.bf16.mxu0 %v751_v3  ;;  %700 = vmatprep.subr.bf16.mxu1 %v751_v3 }
   0xe   :  { %p735_p4 = pnand %p734_p3, %p728_p0 }
  0x10   :  { %690 = vmatpush3.bf16.msra.mxu0 %v689_v13  ;;  %702 = vmatpush3.bf16.msra.mxu1 %v689_v13 }
  0x11   :  { %703 = vmatprep.subr.bf16.mxu0 %v751_v3 }
  0x13   :  { %639 = vmatmul.mubr.msk.f32.vlgmr.msra.gmra.mrb[0].mxu0 %vm37_vm1, %v36_v16  ;;  %658 = vmatmul.mubr.msk.f32.vlgmr.msra.gmra.mrb[0].mxu1 %vm37_vm1, %v111_v17 }
  0x14   :  { %705 = vmatpush3.bf16.msra.mxu0 %v680_v4  ;;  %676 = vmatprep.mubr.msk.f32.mxu0 %vm752_vm0, %v753_v6 }
  0x15   :  { %706 = vmatprep.subr.bf16.mxu0 %v751_v3 }
  0x18   :  { %708 = vmatpush3.bf16.msra.mxu0 %v683_v7 }
  0x19   :  { %709 = vmatprep.subr.bf16.mxu0 %v751_v3 }
  0x1c   :  { %711 = vmatpush3.bf16.msra.mxu0 %v686_v10 }
  0x1d   :  { %712 = vmatprep.subr.bf16.mxu0 %v751_v3 }
  0x20   :  { %714 = vmatpush3.bf16.msra.mxu0 %v689_v13 }
  0x23   :  { %677 = vmatmul.mubr.msk.f32.vlgmr.msra.gmra.mrb[2].mxu0 %vm37_vm1, %v185_v18 }
  0xe6   :  { %v107_v19 = vpop.f32.mrb[0].mxu0  ;;  %v181_v20 = vpop.f32.mrb[0].mxu1 }
  0xe7   :  { %v260_v21 = vadd.f32 1.1920929e-07, %v107_v19  ;;  %v640_v22 = vpop.f32.mrb[1].mxu0  ;;  %v659_v23 = vpop.f32.mrb[1].mxu1  ;;  %v259_v24 = vadd.f32 1.1920929e-07, %v181_v20  ;;  %v265_v28 = vmul.f32 2.0, %v181_v20 }
  0xe9   :  { %721 = vrcp.f32 %v260_v21 }
  0xf3   :  { %v722_v25 = vpop.eup %721 }
  0xf4   :  { %v262_v26 = vmul.f32 %v722_v25, %v259_v24 }
  0xf6   :  { %v263_v27 = vmul.f32 %v262_v26, %v262_v26  ;;  %v266_v29 = vmul.f32 %v262_v26, %v107_v19  ;;  %v255_v30 = vpop.f32.mrb[2].mxu0 }
  0xf7   :  { %v678_v31 = vpop.f32.mrb[3].mxu0 }
  0xf8   :  { %v267_v32 = vsub.f32 %v265_v28, %v266_v29  ;;  %v264_v33 = vmul.f32 %v263_v27, %v107_v19 }
  0xfa   :  { %v268_v34 = vmul.f32 %v267_v32, %v262_v26  ;;  %v271_v38 = vadd.f32 1.1920929e-07, %v264_v33 }
  0xfc   :  { %v269_v35 = vsub.f32 %v255_v30, %v268_v34 }
  0xfe   :  { %v270_v36 = vmax.f32 %v269_v35, 0.0 }
 0x100   :  { %v272_v37 = vadd.f32 1.1920929e-07, %v270_v36 }
 0x102   :  { %723 = vrcp.f32 %v272_v37 }
 0x10c   :  { %v724_v39 = vpop.eup %723 }
 0x10d   :  { %v274_v40 = vmul.f32 %v724_v39, %v271_v38 }
 0x10f   :  { %725 = vlog2.f32 %v274_v40 }
 0x119   :  { %v726_v41 = vpop.eup %725 }
 0x11a   :  { %v276_v42 = vmul.f32 0.6931472, %v726_v41 }
 0x11c   :  { %v277_v43 = vmul.f32 0.4342945, %v276_v42 }
 0x11e   :  { %v278_v44 = vmul.f32 10.0, %v277_v43 }
 0x120   :  { %v280_v45 = vsel %vm279_vm2, %v278_v44, 0.0 }
 0x121   :  { %281 = vadd.xlane.f32.xlu0 %v280_v45 }
 0x1ae   :  { %v282_v46 = vpop.xlane.xlu0 %281 }
 0x1af   :  { %v283_v47 = vrot.slane %v282_v46, 4 }
 0x1b1   :  { %v284_v48 = vadd.f32 %v283_v47, %v282_v46 }
 0x1b3   :  { %v285_v49 = vrot.slane %v284_v48, 2 }
 0x1b5   :  { %v286_v50 = vadd.f32 %v285_v49, %v284_v48 }
 0x1b7   :  { %v287_v51 = vrot.slane %v286_v50, 1 }
 0x1b9   :  { %v288_v52 = vadd.f32 %v287_v51, %v286_v50 }
 0x1bb   :  { %715 = vpush %v288_v52 }
 0x1ec   :  { %s716_s2 = spop %715 }
 0x1ed   :  { %v290_v53 = vstv %s716_s2 }
 0x1ee   :  { %291 = vst [vmem:[#allocation2] sm:$0xff] %v290_v53 }
 0x1ef   :  { %738 = shalt.err (!%p735_p4)
}
 0x1f0   :  { %s739_s8 = scalar_lea.hbm %s823_s3, 128 }
 0x1f1   :  { %p740_p5 = scmp.ne.s32.totalorder %s823_s3, %s739_s8  ;;  %p743_p6 = scmp.lt.u32.totalorder %s739_s8, %s823_s3 }
 0x1f3   :  { %p745_p7 = pnand %p743_p6, %p740_p5 }
 0x1f5   :  { %748 = shalt.err (!%p745_p7)
}
 0x1f6   :  { %584 = dma.vmem_to_hbm [thread:$0]  %s582_s1, 128, %s823_s3, [#allocation3]  }
 0x1f7   :  { %749 = dma.done.wait [#allocation3], 128  }
 0x1f8   :  { %750 = vsyncadd [#allocation3], 4294967168 }
 0x1f9   :  { %588 = vsyncpa [#allocation3], 1 }

</bundles_post_ra>
